<compile_context>
chip_gen: v7x
topology: tpu7x:2x2x1
jax: 0.10.0
libtpu: 0.0.40
codegen_flags: <defaults>
</compile_context>

<pallas_src>
import functools

import jax
import jax.numpy as jnp
import numpy as np
from jax import lax
from jax.experimental import pallas as pl
from jax.experimental.pallas import tpu as pltpu

EPS = 1e-5


# ----------------------------- hardware helpers ------------------------------ #
def _vmem_limit_bytes():
    """Generation-aware scoped-VMEM limit (~75% of physical, capped at 96 MiB)."""
    cap = 64 * 1024 * 1024                      # conservative default (v7x per core)
    try:
        info = pltpu.get_tpu_info()
        cap = int(getattr(info, "vmem_capacity_bytes", cap) or cap)
    except Exception:
        pass
    return min((cap * 3) // 4, 96 * 1024 * 1024)


def _choose_tile_hw(hw, cap_px):
    """Largest lane-legal pixel tile: a multiple of 128 dividing hw, or full hw."""
    if hw <= cap_px:
        return hw
    t = (min(cap_px, hw) // 128) * 128
    while t >= 128:
        if hw % t == 0:
            return t
        t -= 128
    # TODO(synk): masked tail tiles for awkward H*W; fall back to the full plane.
    return hw


# ------------------------------ Pallas kernels ------------------------------ #
def _stats_kernel(x_ref, stats_ref):
    """Per-tile per-channel (mean, M2) over the pixel (lane) axis."""
    x = x_ref[0].astype(jnp.float32)                       # (C, thw)
    m = jnp.mean(x, axis=-1, keepdims=True)                # (C, 1)
    d = x - m
    stats_ref[0, 0, :, 0:1] = m
    stats_ref[0, 0, :, 1:2] = jnp.sum(d * d, axis=-1, keepdims=True)


def _bnrelu_conv1x1_kernel(x_ref, aff_ref, w_ref, b_ref, y_ref, stats_ref,
                           *, mm_dtype):
    """y = w @ relu(x*scale+shift) + b (1x1 conv, channel-major) + stats of y."""
    x = x_ref[0].astype(jnp.float32)                       # (Cin, thw)
    z = jnp.maximum(x * aff_ref[:, 0:1] + aff_ref[:, 1:2], 0.0)
    y = jnp.dot(w_ref[...], z.astype(mm_dtype),
                preferred_element_type=jnp.float32) + b_ref[...]
    y_ref[0] = y.astype(y_ref.dtype)
    m = jnp.mean(y, axis=-1, keepdims=True)
    d = y - m
    stats_ref[0, 0, :, 0:1] = m
    stats_ref[0, 0, :, 1:2] = jnp.sum(d * d, axis=-1, keepdims=True)


def _bnrelu_conv3x3_kernel(y1_ref, aff_ref, w2_ref, b_ref, y2_ref, stats_ref,
                           zp_ref, *, H, W, mm_dtype):
    """Per image: z = relu(bn1(y1)); 3x3 conv (pad=1) as 9 accumulated
    (Co,Ci)@(Ci,HW) matmuls over shifted slices of a zero-bordered flat scratch."""
    HW = H * W
    Ci = y1_ref.shape[1]
    Co = b_ref.shape[0]
    pad = W + 1

    z = jnp.maximum(y1_ref[0].astype(jnp.float32) * aff_ref[:, 0:1]
                    + aff_ref[:, 1:2], 0.0)                # (Ci, HW)

    # Zero-bordered flattened (row-major) plane: the pad rows absorb the
    # h-boundary taps automatically; the w-boundary wrap is masked below.
    # (Pads are re-zeroed each step so megacore-parallel grids stay correct.)
    zp_ref[:, 0:pad] = jnp.zeros((Ci, pad), zp_ref.dtype)
    zp_ref[:, pad + HW:pad + HW + pad] = jnp.zeros((Ci, pad), zp_ref.dtype)
    zp_ref[:, pad:pad + HW] = z.astype(zp_ref.dtype)

    wcol = lax.broadcasted_iota(jnp.int32, (1, HW), 1) % W  # output pixel's w
    acc = jnp.zeros((Co, HW), jnp.float32)
    for dx in range(3):
        part = jnp.zeros((Co, HW), jnp.float32)
        for dy in range(3):
            s = dy * W + dx                                 # shifted window start
            tap = zp_ref[:, s:s + HW]                       # (Ci, HW), mm dtype
            part = part + jnp.dot(w2_ref[dy * 3 + dx], tap,
                                  preferred_element_type=jnp.float32)
        if dx == 0:                                         # input col w-1 OOB @ w==0
            part = jnp.where(wcol >= 1, part, 0.0)
        elif dx == 2:                                       # input col w+1 OOB @ w==W-1
            part = jnp.where(wcol <= W - 2, part, 0.0)
        acc = acc + part

    y2 = acc + b_ref[...]
    y2_ref[0] = y2.astype(y2_ref.dtype)
    m = jnp.mean(y2, axis=-1, keepdims=True)                # stats from f32 values
    d = y2 - m
    stats_ref[0, :, 0:1] = m
    stats_ref[0, :, 1:2] = jnp.sum(d * d, axis=-1, keepdims=True)


def _final_kernel(y2_ref, x_ref, aff_ref, w3_ref, w4_ref, b_ref, o_ref,
                  *, mm_dtype):
    """out = w3 @ relu(bn2(y2)) + w4 @ x + (b3+b4): two accumulated dots."""
    z = jnp.maximum(y2_ref[0].astype(jnp.float32) * aff_ref[:, 0:1]
                    + aff_ref[:, 1:2], 0.0)
    o = jnp.dot(w3_ref[...], z.astype(mm_dtype), preferred_element_type=jnp.float32)
    o = o + jnp.dot(w4_ref[...], x_ref[0].astype(mm_dtype),
                    preferred_element_type=jnp.float32)
    o = o + b_ref[...]
    o_ref[0] = o.astype(o_ref.dtype)


# --------------------------------- wrapper ---------------------------------- #
def _bn_affine(stats, count_per_tile, gamma, beta):
    """Exactly combine per-tile (mean, M2) (Chan) -> biased BN var; fold gamma/beta."""
    st = stats.reshape(-1, stats.shape[-2], 2).astype(jnp.float32)
    means = st[..., 0]                                      # (G, C)
    m2s = st[..., 1]                                        # (G, C)
    g = st.shape[0]
    n = g * count_per_tile
    mean = jnp.mean(means, axis=0)
    m2 = jnp.sum(m2s, axis=0) + count_per_tile * jnp.sum((means - mean) ** 2, axis=0)
    var = jnp.maximum(m2 / n, 0.0)
    scale = gamma / jnp.sqrt(var + EPS)
    shift = beta - mean * scale
    return jnp.stack([scale, shift], axis=1).astype(jnp.float32)   # (C, 2)


def residual_forward(x_nchw, p, *, compute_dtype=jnp.bfloat16):
    """x_nchw: (N, Cin, H, W) float32 -> (N, Cout, H, W).

    compute_dtype controls the matmul operands and the y1/y2 HBM intermediates
    (bf16 recommended on v6e/v7x).  BN stats + all elementwise math stay f32.
    """
    N, Cin, H, W = x_nchw.shape
    HW = H * W
    R = N * HW
    f32 = jnp.float32
    cd = compute_dtype
    cdb = jnp.dtype(cd).itemsize

    # Repack weights.  Channel-major needs (Cout, Cin) directly from OIHW (no
    # transpose for the 1x1 convs); the 3x3 conv becomes 9 (Co, Ci) tap matrices.
    w1 = p["w1"][:, :, 0, 0].astype(cd)                      # (Ch, Cin)
    Ch = w1.shape[0]
    b1 = p["b1"].reshape(Ch, 1).astype(f32)
    w2 = jnp.transpose(p["w2"], (2, 3, 0, 1)).reshape(9, Ch, Ch).astype(cd)
    b2 = p["b2"].reshape(Ch, 1).astype(f32)
    w3 = p["w3"][:, :, 0, 0].astype(cd)                      # (Cout, Ch)
    w4 = p["w4"][:, :, 0, 0].astype(cd)                      # (Cout, Cin)
    Cout = w3.shape[0]
    b34 = (p["b3"] + p["b4"]).reshape(Cout, 1).astype(f32)

    # Channel-major, pixel axis last (lane-dense).  Pure reshape, no transpose.
    x3 = x_nchw.reshape(N, Cin, HW).astype(f32)

    vmem_limit = _vmem_limit_bytes()
    # bytes/pixel across blocked operands of the heaviest pass, double-buffered;
    # keep half the limit as headroom for weights / stats / scratch.
    bpp = 4 * (Cin + Cout) + 2 * cdb * Ch
    thw = _choose_tile_hw(HW, max(128, (vmem_limit // 2) // (2 * bpp)))
    nhw = HW // thw

    def cparams(ndim):
        return pltpu.CompilerParams(
            dimension_semantics=("parallel",) * ndim,
            vmem_limit_bytes=vmem_limit)

    # ---- pass 0: per-tile (mean, M2) of x -> bn affine ----------------------
    stats0 = pl.pallas_call(
        _stats_kernel,
        grid=(N, nhw),
        in_specs=[pl.BlockSpec((1, Cin, thw), lambda n, j: (n, 0, j))],
        out_specs=pl.BlockSpec((1, 1, Cin, 2), lambda n, j: (n, j, 0, 0)),
        out_shape=jax.ShapeDtypeStruct((N, nhw, Cin, 2), f32),
        compiler_params=cparams(2),
        cost_estimate=pl.CostEstimate(flops=4 * R * Cin, transcendentals=0,
                                      bytes_accessed=4 * R * Cin),
    )(x3)
    aff0 = _bn_affine(stats0, thw, p["g0"], p["be0"])

    # ---- pass 1: relu(bn(x)) -> conv1 (1x1), partial stats of y1 ------------
    y1, stats1 = pl.pallas_call(
        functools.partial(_bnrelu_conv1x1_kernel, mm_dtype=cd),
        grid=(N, nhw),
        in_specs=[
            pl.BlockSpec((1, Cin, thw), lambda n, j: (n, 0, j)),
            pl.BlockSpec((Cin, 2), lambda n, j: (0, 0)),
            pl.BlockSpec((Ch, Cin), lambda n, j: (0, 0)),
            pl.BlockSpec((Ch, 1), lambda n, j: (0, 0)),
        ],
        out_specs=(
            pl.BlockSpec((1, Ch, thw), lambda n, j: (n, 0, j)),
            pl.BlockSpec((1, 1, Ch, 2), lambda n, j: (n, j, 0, 0)),
        ),
        out_shape=(
            jax.ShapeDtypeStruct((N, Ch, HW), cd),
            jax.ShapeDtypeStruct((N, nhw, Ch, 2), f32),
        ),
        compiler_params=cparams(2),
        cost_estimate=pl.CostEstimate(
            flops=2 * R * Cin * Ch + 6 * R * (Cin + Ch), transcendentals=0,
            bytes_accessed=R * (4 * Cin + cdb * Ch)),
    )(x3, aff0, w1, b1)
    aff1 = _bn_affine(stats1, thw, p["g1"], p["be1"])

    # ---- pass 2: relu(bn1(y1)) -> conv2 (3x3, pad 1), one image per step ----
    # TODO(synk): for very large H*W*Ch, tile within the image (1-row halo) so a
    # block + scratch stays well under v7x's 64 MiB VMEM.
    y2, stats2 = pl.pallas_call(
        functools.partial(_bnrelu_conv3x3_kernel, H=H, W=W, mm_dtype=cd),
        grid=(N,),
        in_specs=[
            pl.BlockSpec((1, Ch, HW), lambda n: (n, 0, 0)),
            pl.BlockSpec((Ch, 2), lambda n: (0, 0)),
            pl.BlockSpec((9, Ch, Ch), lambda n: (0, 0, 0)),
            pl.BlockSpec((Ch, 1), lambda n: (0, 0)),
        ],
        out_specs=(
            pl.BlockSpec((1, Ch, HW), lambda n: (n, 0, 0)),
            pl.BlockSpec((1, Ch, 2), lambda n: (n, 0, 0)),
        ),
        out_shape=(
            jax.ShapeDtypeStruct((N, Ch, HW), cd),
            jax.ShapeDtypeStruct((N, Ch, 2), f32),
        ),
        scratch_shapes=[pltpu.VMEM((Ch, HW + 2 * (W + 1)), cd)],
        compiler_params=cparams(1),
        cost_estimate=pl.CostEstimate(
            flops=2 * R * 9 * Ch * Ch + 8 * R * Ch, transcendentals=0,
            bytes_accessed=2 * R * cdb * Ch),
    )(y1, aff1, w2, b2)
    aff2 = _bn_affine(stats2, HW, p["g2"], p["be2"])

    # ---- pass 3: relu(bn2(y2)) -> conv3 (1x1) + residual conv4 (2 acc dots) --
    out3 = pl.pallas_call(
        functools.partial(_final_kernel, mm_dtype=cd),
        grid=(N, nhw),
        in_specs=[
            pl.BlockSpec((1, Ch, thw), lambda n, j: (n, 0, j)),
            pl.BlockSpec((1, Cin, thw), lambda n, j: (n, 0, j)),
            pl.BlockSpec((Ch, 2), lambda n, j: (0, 0)),
            pl.BlockSpec((Cout, Ch), lambda n, j: (0, 0)),
            pl.BlockSpec((Cout, Cin), lambda n, j: (0, 0)),
            pl.BlockSpec((Cout, 1), lambda n, j: (0, 0)),
        ],
        out_specs=pl.BlockSpec((1, Cout, thw), lambda n, j: (n, 0, j)),
        out_shape=jax.ShapeDtypeStruct((N, Cout, HW), x_nchw.dtype),
        compiler_params=cparams(2),
        cost_estimate=pl.CostEstimate(
            flops=2 * R * (Ch + Cin) * Cout + 4 * R * Ch, transcendentals=0,
            bytes_accessed=R * (cdb * Ch + 4 * Cin + 4 * Cout)),
    )(y2, x3, aff2, w3, w4, b34)

    return out3.reshape(N, Cout, H, W)


# --------------------------- parameter initialization ------------------------ #
def init_params(key, num_in, num_out):
    half = num_out // 2

    def kaiming(k, shape):  # PyTorch kaiming_normal_(mode='fan_out', relu)
        fan_out = shape[0] * shape[2] * shape[3]
        std = float(np.sqrt(2.0 / fan_out))
        return jax.random.normal(k, shape, jnp.float32) * std

    k1, k2, k3, k4 = jax.random.split(key, 4)
    ones = lambda c: jnp.ones((c,), jnp.float32)
    zeros = lambda c: jnp.zeros((c,), jnp.float32)
    return dict(
        w1=kaiming(k1, (half, num_in, 1, 1)), b1=zeros(half),
        w2=kaiming(k2, (half, half, 3, 3)), b2=zeros(half),
        w3=kaiming(k3, (num_out, half, 1, 1)), b3=zeros(num_out),
        w4=kaiming(k4, (num_out, num_in, 1, 1)), b4=zeros(num_out),
        g0=ones(num_in), be0=zeros(num_in),
        g1=ones(half), be1=zeros(half),
        g2=ones(half), be2=zeros(half),
    )


# ----------------------------- pure-JAX reference ---------------------------- #
def reference_forward(x, p):
    def bn(z, gamma, beta):
        mean = z.mean(axis=(0, 2, 3), keepdims=True)
        var = ((z - mean) ** 2).mean(axis=(0, 2, 3), keepdims=True)
        return ((z - mean) / jnp.sqrt(var + EPS) * gamma.reshape(1, -1, 1, 1)
                + beta.reshape(1, -1, 1, 1))

    def conv(z, w, b, padding):
        y = lax.conv_general_dilated(z, w, (1, 1), padding,
                                     dimension_numbers=("NCHW", "OIHW", "NCHW"))
        return y + b.reshape(1, -1, 1, 1)

    out = jax.nn.relu(bn(x, p["g0"], p["be0"]))
    out = conv(out, p["w1"], p["b1"], "VALID")
    out = jax.nn.relu(bn(out, p["g1"], p["be1"]))
    out = conv(out, p["w2"], p["b2"], [(1, 1), (1, 1)])
    out = jax.nn.relu(bn(out, p["g2"], p["be2"]))
    out = conv(out, p["w3"], p["b3"], "VALID")
    res = conv(x, p["w4"], p["b4"], "VALID")
    return out + res


if __name__ == "__main__":
    num_in, num_out = 4, 8          # numIn != numOut -> conv4 residual path
    N, H, W = 2, 16, 16

    key = jax.random.PRNGKey(0)
    kx, kp = jax.random.split(key)
    x = jax.random.normal(kx, (N, num_in, H, W), jnp.float32)
    params = init_params(kp, num_in, num_out)

    ref = reference_forward(x, params)

    # Exact path: f32 matmul operands / f32 intermediates.
    out_f32 = jax.block_until_ready(
        residual_forward(x, params, compute_dtype=jnp.float32))
    np.testing.assert_allclose(np.asarray(out_f32), np.asarray(ref),
                               rtol=2e-2, atol=2e-2)

    # Fast path (v6e/v7x): bf16 MXU operands + bf16 y1/y2 intermediates;
    # bf16 has an 8-bit mantissa, so use a correspondingly looser bound.
    out_bf16 = jax.block_until_ready(
        residual_forward(x, params, compute_dtype=jnp.bfloat16))
    np.testing.assert_allclose(np.asarray(out_bf16), np.asarray(ref),
                               rtol=5e-2, atol=1e-1)

    print("KERNEL_OK")
</pallas_src>

<mosaic_0001>
module attributes {stable_mosaic.version = 11 : i64} {
  func.func @_stats_kernel(%arg0: i32, %arg1: i32, %arg2: memref<1x4x256xf32, #tpu.memory_space<vmem>>, %arg3: memref<1x1x4x2xf32, #tpu.memory_space<vmem>>) attributes {dimension_semantics = [#tpu.dimension_semantics<parallel>, #tpu.dimension_semantics<parallel>], iteration_bounds = array<i64: 2, 1>, scalar_prefetch = 0 : i64, scratch_operands = 0 : i64, tpu.core_type = #tpu.core_type<tc>, window_params = [{transform_indices = @transform_0, window_bounds = array<i64: 1, 4, 256>}, {transform_indices = @transform_1, window_bounds = array<i64: 1, 1, 4, 2>}]} {
    %c0 = arith.constant 0 : index
    %c0_0 = arith.constant 0 : index
    %c0_1 = arith.constant 0 : index
    %0 = vector.load %arg2[%c0, %c0_0, %c0_1] : memref<1x4x256xf32, #tpu.memory_space<vmem>>, vector<1x4x256xf32>
    %1 = vector.shape_cast %0 : vector<1x4x256xf32> to vector<4x256xf32>
    %cst = arith.constant dense<0.000000e+00> : vector<4xf32>
    %2 = vector.multi_reduction <add>, %1, %cst [1] : vector<4x256xf32> to vector<4xf32>
    %3 = vector.shape_cast %2 : vector<4xf32> to vector<4x1xf32>
    %cst_2 = arith.constant 2.560000e+02 : f32
    %4 = vector.broadcast %cst_2 : f32 to vector<4x1xf32>
    %5 = arith.divf %3, %4 : vector<4x1xf32>
    %6 = vector.broadcast %5 : vector<4x1xf32> to vector<4x256xf32>
    %7 = arith.subf %1, %6 : vector<4x256xf32>
    %c0_3 = arith.constant 0 : index
    %c0_4 = arith.constant 0 : index
    %c0_5 = arith.constant 0 : index
    %c0_6 = arith.constant 0 : index
    %8 = vector.load %arg3[%c0_3, %c0_4, %c0_5, %c0_6] : memref<1x1x4x2xf32, #tpu.memory_space<vmem>>, vector<1x1x4x1xf32>
    %9 = vector.shape_cast %8 : vector<1x1x4x1xf32> to vector<4x1xf32>
    %10 = vector.shape_cast %5 : vector<4x1xf32> to vector<1x1x4x1xf32>
    tpu.vector_store %arg3[%c0_3, %c0_4, %c0_5, %c0_6], %10 {strides = array<i32>} : memref<1x1x4x2xf32, #tpu.memory_space<vmem>>, vector<1x1x4x1xf32>,
    %11 = arith.mulf %7, %7 : vector<4x256xf32>
    %cst_7 = arith.constant dense<0.000000e+00> : vector<4xf32>
    %12 = vector.multi_reduction <add>, %11, %cst_7 [1] : vector<4x256xf32> to vector<4xf32>
    %13 = vector.shape_cast %12 : vector<4xf32> to vector<4x1xf32>
    %c0_8 = arith.constant 0 : index
    %c0_9 = arith.constant 0 : index
    %c0_10 = arith.constant 0 : index
    %c1 = arith.constant 1 : index
    %14 = vector.load %arg3[%c0_8, %c0_9, %c0_10, %c1] : memref<1x1x4x2xf32, #tpu.memory_space<vmem>>, vector<1x1x4x1xf32>
    %15 = vector.shape_cast %14 : vector<1x1x4x1xf32> to vector<4x1xf32>
    %16 = vector.shape_cast %13 : vector<4x1xf32> to vector<1x1x4x1xf32>
    tpu.vector_store %arg3[%c0_8, %c0_9, %c0_10, %c1], %16 {strides = array<i32>} : memref<1x1x4x2xf32, #tpu.memory_space<vmem>>, vector<1x1x4x1xf32>,
    return
  }
  func.func @transform_0(%arg0: i32, %arg1: i32) -> (i32, i32, i32) {
    %c0_i32 = arith.constant 0 : i32
    %c0_i32_0 = arith.constant 0 : i32
    return %arg0, %c0_i32, %arg1 : i32, i32, i32
  }
  func.func @transform_1(%arg0: i32, %arg1: i32) -> (i32, i32, i32, i32) {
    %c0_i32 = arith.constant 0 : i32
    %c0_i32_0 = arith.constant 0 : i32
    %c0_i32_1 = arith.constant 0 : i32
    return %arg0, %arg1, %c0_i32, %c0_i32_0 : i32, i32, i32, i32
  }
}

</mosaic_0001>

<bundles_post_ra>
// kernel: tpu_custom_call.1
= control target key start
LH: loop header
LB: loop body
LE: loop exit
PB: predicated region body
PF: predicated region fallthrough
CT: control target
= control target key end

     0   :  { %6 = vsyncpa [#allocation3], 0  ;;  %s572_s0 = inlined_call_operand.hbm [shape: f32[2,4,256], index: 0, kind: input, shape index: {}]   ;;  %s573_s1 = inlined_call_operand.vmem [shape: f32[2,1,4,2], index: 1, kind: output, shape index: {}]  }
   0x1   :  { %8 = vsyncpa [#allocation3 + $0x1], 0  ;;  %s443_s6 = smov 0   ;;  %s445_s7 = smov 0  }
   0x2   :  { %s447_s8 = smov 0   ;;  %s449_s9 = smov 0  }
   0x3   :  { %s451_s10 = smov 0   ;;  %s453_s11 = smov 0  }
   0x4 LB: > { %s279_s12 = sadd.s32 4294967295, %s429_s11   ;;  %s26_s13 = sadd.s32 1, %s425_s10  ;;  %s429_s11 = sphi %s453_s11, %s14_s11   ;;  %s425_s10 = sphi %s451_s10, %s583_s10   ;;  %s421_s9 = sphi %s449_s9, %s582_s9   ;;  %s417_s8 = sphi %s447_s8, %s581_s8   ;;  %s413_s7 = sphi %s445_s7, %s580_s7   ;;  %s409_s6 = sphi %s443_s6, %s579_s6  }
   0x5   : > { %p28_p0 = scmp.ge.s32.totalorder %s26_s13, 2  ;;  %s35_s14 = sadd.s32 1, %s417_s8 }
   0x6   : > { %p42_p1 = scmp.ne.s32.totalorder %s417_s8, %s413_s7  ;;  %p43_p2 = scmp.eq.s32.totalorder %s429_s11, 0 }
   0x7   : > { %s585_s13 = smov (%p28_p0, %s26_s13), 0  ;;  %p48_p4 = scmp.ne.s32.totalorder %s413_s7, %s409_s6 }
   0x8   : > { %p479_p3 = por %p43_p2, %p42_p1  ;;  %s30_s16 = ssub.s32 %s425_s10, %s585_s13 }
   0x9   : > { %p49_p5 = scmp.eq.s32.totalorder %s279_s12, 0  ;;  %p33_p6 = scmp.eq.s32.totalorder %s30_s16, 0 }
   0xa   : > { %p298_p8 = scmp.lt.s32.totalorder %s429_s11, 2  ;;  %s100_s19 = sand.u32 1, %s417_s8  }
   0xb   : > { %p486_p7 = por %p49_p5, %p48_p4  ;;  %s291_s20 = sshll.u32 %s425_s10, 7 }
   0xc   : > { %s492_s18 = scalar_select %p33_p6, %s417_s8, %s35_s14  }
   0xd   : > { %s283_s21 = sshll.u32 %s100_s19, 3  ;;  %s499_s24 = scalar_lea.hbm %s572_s0, %s291_s20 }
   0xe   : > { %s104_s25 = scalar_lea.vmem [#allocation2], %s283_s21  ;;  %p503_p9 = pnand %p298_p8, %p479_p3 }
   0xf   : > { %s114_s26 = sshll.u32 %s104_s25, 4  ;;  %s101_s28 = scalar_lea.sflag [#allocation3], %s100_s19  ;;  %s507_s26 = int_to_ptr.vmem [resolvable:$true] %s114_s26 }
  0x10   : > { %s349_s29 = scalar_lea.hbm %s499_s24, 128  ;;  %p351_p13 = pneg %p503_p9 }
  0x11   : > { %p350_p12 = scmp.ne.s32.totalorder %s499_s24, %s349_s29  ;;  %s354_s3 = scalar_lea.hbm %s572_s0, 256 }
  0x12   : > { %p355_p2 = scmp.lt.u32.totalorder %s499_s24, %s572_s0  ;;  %p356_p3 = scmp.lt.u32.totalorder %s354_s3, %s349_s29 }
  0x13   : > { %p352_p0 = pnand %p351_p13, %p350_p12  ;;  %p358_p5 = scmp.lt.u32.totalorder %s349_s29, %s499_s24 }
  0x14   : > { %p357_p4 = por %p356_p3, %p355_p2 }
  0x15   : > { %p353_p1 = pneg %p352_p0 }
  0x16   : > { %p359_p6 = por %p358_p5, %p357_p4 }
  0x18   : > { %p360_p8 = pnand %p359_p6, %p353_p1 }
  0x1a   : > { %363 = shalt.err (!%p360_p8)
}
  0x1b   : > { %s364_s6 = scalar_lea.vmem %s507_s26, 128  ;;  %s431_s12 = smov [#allocation2]  }
  0x1c   : > { %p365_p12 = scmp.ne.s32.totalorder %s507_s26, %s364_s6  ;;  %s369_s14 = sshll.u32 %s431_s12, 4  ;;  %s370_s14 = int_to_ptr.vmem [resolvable:$false] %s369_s14 }
  0x1d   : > { %s371_s15 = scalar_lea.vmem %s370_s14, 256  ;;  %p372_p11 = scmp.lt.s32.totalorder %s507_s26, %s370_s14 }
  0x1e   : > { %p367_p0 = pnand %p365_p12, %p351_p13  ;;  %p373_p2 = scmp.lt.s32.totalorder %s371_s15, %s364_s6 }
  0x20   : > { %p368_p10 = pneg %p367_p0  ;;  %p374_p3 = por %p373_p2, %p372_p11 }
  0x22   : > { %p375_p4 = pnand %p374_p3, %p368_p10 }
  0x24   : > { %378 = shalt.err (!%p375_p4)
}
  0x25   : > { %297 = dma.hbm_to_vmem [thread:$0]  (!%p503_p9), %s499_s24, 128, %s507_s26, %s101_s28  }
  0x26   : > { %p577_p1 = scmp.lt.s32.totalorder %s429_s11, 3  ;;  %p578_p5 = scmp.ge.s32.totalorder %s429_s11, 1 }
  0x28   : > { %p120_p13 = pnand %p578_p5, %p577_p1 }
  0x29   : > { %s125_s16 = sand.u32 (!%p120_p13), 1, %s413_s7  }
  0x2a   : > { %123 = sbr.rel (%p120_p13) target bundleno = 354 (0x162), region = 24  ;;  %s287_s19 = sshll.u32 (!%p120_p13), %s125_s16, 3 }
  0x2b   : > { %s126_s20 = scalar_lea.sflag (!%p120_p13), [#allocation3], %s125_s16  ;;  %s129_s21 = scalar_lea.vmem (!%p120_p13), [#allocation2], %s287_s19 }
  0x31   : > { %404 = dma.done.wait (%p486_p7), %s126_s20, 128  }
  0x32   : > { %406 = vsyncadd (%p486_p7), %s126_s20, 4294967168  ;;  %vm162_vm0 = vcmask 1043456   ;;  %v158_v0 = vld [vmem:[%s129_s21] sm:$0xff]  ;;  %p151_p9 = scmp.lt.s32.totalorder %s421_s9, 1  ;;  %v432_v5 = vmov 839922192   ;;  %v174_v7 = vlaneseq }
  0x33   : > { %v160_v1 = vcombine.high %v158_v0, %v158_v0  ;;  %v163_v2 = vsel %vm162_vm0, %v158_v0, 0.0  ;;  %v172_v6 = vunpack.c.l.s4 %v432_v5  ;;  %vm180_vm1 = vcmask 3072  }
  0x34   : > { %s587_s9 = smov (!%p151_p9, %s421_s9), 1  ;;  %v175_v9 = vshrl.u32 %v174_v7, 7  ;;  %vm191_vm2 = vcmask 11272  }
  0x35   : > { %v164_v3 = vsel %vm162_vm0, %v160_v1, 0.0  ;;  %v173_v8 = vunpack.c.0.s8 %v172_v6  ;;  %s288_s17 = sshll.u32 %s587_s9, 2 }
  0x36   : > { %v165_v4 = vadd.f32 %v164_v3, %v163_v2  ;;  %s157_s24 = scalar_lea.vmem %s573_s1, %s288_s17 }
  0x37   : > { %v176_v10 = vsub.s32 %v173_v8, %v175_v9 }
  0x38   : > { %166 = vadd.xlane.f32.xlu0 %v165_v4 }
  0xc5   : > { %v167_v11 = vpop.xlane.xlu0 %166 }
  0xc6   : > { %v169_v12 = vmul.f32 0.00390625, %v167_v11 }
  0xc8   : > { %v177_v13 = vrot.slane %v169_v12, %v176_v10  ;;  %181 = vst.msk [vmem:[%s157_s24] sm:$0xf] %vm180_vm1, %v169_v12 }
  0xca   : > { %v179_v14 = vsub.f32 %v158_v0, %v177_v13 }
  0xcc   : > { %v182_v15 = vmul.f32 %v179_v14, %v179_v14 }
  0xce   : > { %v184_v16 = vcombine.high %v182_v15, %v182_v15  ;;  %v186_v17 = vsel %vm162_vm0, %v182_v15, 0.0 }
  0xd0   : > { %v187_v18 = vsel %vm162_vm0, %v184_v16, 0.0 }
  0xd1   : > { %v188_v19 = vadd.f32 %v187_v18, %v186_v17 }
  0xd3   : > { %189 = vadd.xlane.f32.xlu0 %v188_v19 }
 0x160   : > { %v190_v20 = vpop.xlane.xlu0 %189 }
 0x161   : > { %192 = vst.msk [vmem:[%s157_s24] sm:$0xf] %vm191_vm2, %v190_v20 }
 0x162 PF: > { %s14_s11 = sadd.s32 1, %s429_s11   ;;  %s579_s6 = smov %s413_s7 }
 0x163   : > { %p11_p7 = scmp.ge.s32.totalorder %s14_s11, 4   ;;  %s580_s7 = smov %s417_s8 }
 0x164   : > { %s581_s8 = smov %s492_s18  ;;  %s582_s9 = smov %s425_s10 }
 0x165   : > { %s583_s10 = smov %s585_s13  ;;  %13 = sbr.rel (!%p11_p7) target bundleno = 4 (0x4), region = 64 }
 0x16c   :  { %218 = vsyncpa [#allocation3], 1 }
 0x16d   :  { %220 = vsyncpa [#allocation3 + $0x1], 1 }

</bundles_post_ra>
